<compile_context>
chip_gen: v6e
topology: v6e:2x2x1
jax: 0.10.0
libtpu: 0.0.40
codegen_flags: <defaults>
</compile_context>

<pallas_src>
import functools

import jax
import jax.numpy as jnp
from jax.experimental import pallas as pl
from jax.experimental.pallas import tpu as pltpu


def _streamed_lse_kernel(x_ref, feat_ref, lse_ref, m_ref, l_ref, *, c_total, block_c):
    """Grid axis = C tiles of the memory bank (reduction axis).

    x_ref    : (B, F) bf16 L2-normalized inputs pre-scaled by 1/temp (resident).
    feat_ref : (block_c, F) bf16 tile of the cluster-memory bank (streamed).
    lse_ref  : (B, 1) f32 per-row logsumexp of the scaled logits (written on last tile).
    m_ref/l_ref : (B, 1) f32 online-softmax running max / running sum-exp.
    """
    k = pl.program_id(0)
    n_tiles = pl.num_programs(0)

    @pl.when(k == 0)
    def _init():
        m_ref[...] = jnp.full_like(m_ref, -jnp.inf)
        l_ref[...] = jnp.zeros_like(l_ref)

    # One MXU matmul per tile in natural layouts (contract last dim of both; no .T).
    logits = jax.lax.dot_general(
        x_ref[...], feat_ref[...],
        dimension_numbers=(((1,), (1,)), ((), ())),
        preferred_element_type=jnp.float32)                  # (B, block_c) == logits / temp

    if c_total % block_c != 0:
        # Only the last tile carries padded (out-of-range) columns; on earlier tiles
        # `remaining >= block_c` so the select keeps everything.  This whole block is
        # removed at trace time when C is a multiple of block_c.
        remaining = c_total - k * block_c
        col = jax.lax.broadcasted_iota(jnp.int32, logits.shape, 1)
        logits = jnp.where(col < remaining, logits, -jnp.inf)

    # Online softmax (running max / running sum-exp).
    m_prev = m_ref[...]
    m_new = jnp.maximum(m_prev, jnp.max(logits, axis=1, keepdims=True))
    p = jnp.exp(logits - m_new)
    l_ref[...] = jnp.exp(m_prev - m_new) * l_ref[...] + jnp.sum(p, axis=1, keepdims=True)
    m_ref[...] = m_new

    @pl.when(k == n_tiles - 1)
    def _finalize():
        lse_ref[...] = m_ref[...] + jnp.log(l_ref[...])


def _vmem_capacity_bytes():
    try:
        return int(pltpu.get_tpu_info().vmem_capacity_bytes)
    except Exception:
        return 64 * 1024 * 1024        # conservative fallback: v7x per-TensorCore VMEM


def _pick_block_c(B, F, C):
    """VMEM-budgeted bank tile size, rounded to a multiple of 256 lanes."""
    cap = _vmem_capacity_bytes()
    budget = int(cap * 0.70)                   # leave headroom for in/out buffers & spills
    per_col = 2 * F * 2 + 4 * B                # double-buffered bf16 bank row + f32 logits col
    fixed = 2 * B * F * 2 + 4 * B * 8          # resident bf16 inputs (2 bufs) + accumulators/out
    max_c = max(256, (budget - fixed) // per_col)
    bc = int(min(C, 2048, max_c))
    if bc < C:
        bc = max(256, (bc // 256) * 256)       # full 128/256-lane tiles for the MXU N dim
        bc = min(bc, C)
    return bc, cap


def cluster_memory_forward(inputs, features, targets, temp=0.05, block_c=None):
    """Pallas implementation of ClusterMemory.forward(inputs, targets, cameras, cam=False)."""
    B, F = inputs.shape
    C, F2 = features.shape
    assert F == F2
    inv_temp = 1.0 / temp

    cap = None
    if block_c is None:
        block_c, cap = _pick_block_c(B, F, C)
    else:
        block_c = min(int(block_c), C)
        if block_c < C:
            block_c = max(8, (block_c // 8) * 8)
    if cap is None:
        cap = _vmem_capacity_bytes()
    num_tiles = pl.cdiv(C, block_c)

    # ---- wrapper-side prologue: tiny B*F work, shared with the hoisted picked logit ----
    x = inputs.astype(jnp.float32)
    x_n = x / jnp.maximum(jnp.linalg.norm(x, axis=1, keepdims=True), 1e-12)   # F.normalize eps
    tgt = targets.astype(jnp.int32)
    picked = jnp.sum(x_n * features.astype(jnp.float32)[tgt], axis=1) * inv_temp   # (B,)

    x_bf16 = (x_n * inv_temp).astype(jnp.bfloat16)     # fold 1/temp; bf16 for the MXU path
    feat_bf16 = features.astype(jnp.bfloat16)          # halve HBM bytes of the bank stream

    kernel = functools.partial(_streamed_lse_kernel, c_total=C, block_c=block_c)
    cost = pl.CostEstimate(
        flops=2 * B * F * C,
        transcendentals=B * C,
        bytes_accessed=C * F * 2 + B * F * 2 + B * 4,
    )
    vmem_limit = max(32 * 1024 * 1024, min(int(cap * 0.90), 120 * 1024 * 1024))

    lse = pl.pallas_call(
        kernel,
        out_shape=jax.ShapeDtypeStruct((B, 1), jnp.float32),
        grid=(num_tiles,),
        in_specs=[
            pl.BlockSpec((B, F), lambda k: (0, 0)),           # normalized inputs: resident
            pl.BlockSpec((block_c, F), lambda k: (k, 0)),     # memory bank: streamed C tiles
        ],
        out_specs=pl.BlockSpec((B, 1), lambda k: (0, 0)),     # per-row logsumexp
        scratch_shapes=[
            pltpu.VMEM((B, 1), jnp.float32),                  # running max
            pltpu.VMEM((B, 1), jnp.float32),                  # running sum-exp
        ],
        compiler_params=pltpu.CompilerParams(
            dimension_semantics=("arbitrary",),               # C axis is a reduction
            vmem_limit_bytes=vmem_limit,
        ),
        cost_estimate=cost,
    )(x_bf16, feat_bf16)

    return jnp.mean(lse[:, 0] - picked)


def _reference_forward(inputs, features, targets, temp=0.05):
    """Pure-JAX f32 reference for validation."""
    x = inputs.astype(jnp.float32)
    x_n = x / jnp.maximum(jnp.linalg.norm(x, axis=1, keepdims=True), 1e-12)
    logits = (x_n @ features.astype(jnp.float32).T) / temp
    lse = jax.scipy.special.logsumexp(logits, axis=1)
    picked = jnp.take_along_axis(logits, targets[:, None].astype(jnp.int32), axis=1)[:, 0]
    return jnp.mean(lse - picked)


if __name__ == "__main__":
    # Small, module-consistent shapes: batch=8, num_features=128, num_samples=40 clusters.
    B, NUM_FEATURES, NUM_SAMPLES = 8, 128, 40
    TEMP = 0.05

    key = jax.random.PRNGKey(0)
    k_in, k_feat, k_tgt = jax.random.split(key, 3)

    inputs = jax.random.normal(k_in, (B, NUM_FEATURES), dtype=jnp.float32)
    # Cluster-memory bank: (num_samples, num_features) of L2-normalized centroids.
    features = jax.random.normal(k_feat, (NUM_SAMPLES, NUM_FEATURES), dtype=jnp.float32)
    features = features / jnp.linalg.norm(features, axis=1, keepdims=True)
    targets = jax.random.randint(k_tgt, (B,), 0, NUM_SAMPLES, dtype=jnp.int32)

    ref = _reference_forward(inputs, features, targets, temp=TEMP)

    # 1) multi-tile streamed path with a masked tail (40 = 2*16 + 8 -> 3 C tiles)
    loss_tiled = jax.block_until_ready(
        cluster_memory_forward(inputs, features, targets, temp=TEMP, block_c=16))
    # 2) default VMEM-budgeted tiling (single full tile at this small C)
    loss_auto = jax.block_until_ready(
        cluster_memory_forward(inputs, features, targets, temp=TEMP))

    # bf16 bank/input streaming carries ~2^-8 relative logit error vs the f32 reference.
    assert jnp.isfinite(loss_tiled) and jnp.isfinite(loss_auto)
    assert jnp.allclose(loss_tiled, ref, rtol=2e-2, atol=5e-2), (loss_tiled, ref)
    assert jnp.allclose(loss_auto, ref, rtol=2e-2, atol=5e-2), (loss_auto, ref)
    assert jnp.allclose(loss_tiled, loss_auto, rtol=1e-3, atol=1e-3), (loss_tiled, loss_auto)

    print("KERNEL_OK")
</pallas_src>

<mosaic_0001>
module attributes {stable_mosaic.version = 11 : i64} {
  func.func @_streamed_lse_kernel(%arg0: i32, %arg1: memref<8x128xbf16, #tpu.memory_space<vmem>>, %arg2: memref<16x128xbf16, #tpu.memory_space<vmem>>, %arg3: memref<8x1xf32, #tpu.memory_space<vmem>>, %arg4: memref<8x1xf32, #tpu.memory_space<vmem>>, %arg5: memref<8x1xf32, #tpu.memory_space<vmem>>) attributes {dimension_semantics = [#tpu.dimension_semantics<arbitrary>], iteration_bounds = array<i64: 3>, scalar_prefetch = 0 : i64, scratch_operands = 2 : i64, tpu.core_type = #tpu.core_type<tc>, window_params = [{pipeline_mode = #tpu.pipeline_mode<synchronous>, transform_indices = @transform_0, window_bounds = array<i64: 8, 128>}, {transform_indices = @transform_1, window_bounds = array<i64: 16, 128>}, {pipeline_mode = #tpu.pipeline_mode<synchronous>, transform_indices = @transform_2, window_bounds = array<i64: 8, 1>}]} {
    %c0_i32 = arith.constant 0 : i32
    %0 = arith.cmpi eq, %arg0, %c0_i32 : i32
    %1 = arith.extui %0 : i1 to i32
    %c0_i32_0 = arith.constant 0 : i32
    %2 = arith.cmpi ne, %1, %c0_i32_0 : i32
    scf.if %2 {
      %cst_16 = arith.constant 0xFF800000 : f32
      %32 = vector.broadcast %cst_16 : f32 to vector<8x1xf32>
      %c0_17 = arith.constant 0 : index
      %c0_18 = arith.constant 0 : index
      %33 = vector.load %arg4[%c0_17, %c0_18] : memref<8x1xf32, #tpu.memory_space<vmem>>, vector<8x1xf32>
      tpu.vector_store %arg4[%c0_17, %c0_18], %32 {strides = array<i32>} : memref<8x1xf32, #tpu.memory_space<vmem>>, vector<8x1xf32>,
      %cst_19 = arith.constant 0.000000e+00 : f32
      %34 = vector.broadcast %cst_19 : f32 to vector<8x1xf32>
      %c0_20 = arith.constant 0 : index
      %c0_21 = arith.constant 0 : index
      %35 = vector.load %arg5[%c0_20, %c0_21] : memref<8x1xf32, #tpu.memory_space<vmem>>, vector<8x1xf32>
      tpu.vector_store %arg5[%c0_20, %c0_21], %34 {strides = array<i32>} : memref<8x1xf32, #tpu.memory_space<vmem>>, vector<8x1xf32>,
    } else {
    }
    %c0 = arith.constant 0 : index
    %c0_1 = arith.constant 0 : index
    %3 = vector.load %arg1[%c0, %c0_1] : memref<8x128xbf16, #tpu.memory_space<vmem>>, vector<8x128xbf16>
    %c0_2 = arith.constant 0 : index
    %c0_3 = arith.constant 0 : index
    %4 = vector.load %arg2[%c0_2, %c0_3] : memref<16x128xbf16, #tpu.memory_space<vmem>>, vector<16x128xbf16>
    %cst = arith.constant dense<0.000000e+00> : vector<8x16xf32>
    %5 = tpu.matmul %3, %4, %cst {dimension_numbers = #tpu.dot_dimension_numbers<[1], [1], [0], [0], [0, 0, 1, 0], [], []>} : vector<8x128xbf16>, vector<16x128xbf16>, vector<8x16xf32> -> vector<8x16xf32>
    %c16_i32 = arith.constant 16 : i32
    %6 = arith.muli %arg0, %c16_i32 : i32
    %c40_i32 = arith.constant 40 : i32
    %7 = arith.subi %c40_i32, %6 : i32
    %8 = tpu.iota {dimensions = array<i32: 1>} : vector<8x16xi32>
    %9 = vector.broadcast %7 : i32 to vector<8x16xi32>
    %10 = arith.cmpi slt, %8, %9 : vector<8x16xi32>
    %cst_4 = arith.constant 0xFF800000 : f32
    %11 = vector.broadcast %cst_4 : f32 to vector<8x16xf32>
    %12 = arith.select %10, %5, %11 : vector<8x16xi1>, vector<8x16xf32>
    %c0_5 = arith.constant 0 : index
    %c0_6 = arith.constant 0 : index
    %13 = vector.load %arg4[%c0_5, %c0_6] : memref<8x1xf32, #tpu.memory_space<vmem>>, vector<8x1xf32>
    %cst_7 = arith.constant dense<0xFF800000> : vector<8xf32>
    %14 = vector.multi_reduction <maximumf>, %12, %cst_7 [1] : vector<8x16xf32> to vector<8xf32>
    %15 = vector.shape_cast %14 : vector<8xf32> to vector<8x1xf32>
    %16 = arith.maximumf %13, %15 : vector<8x1xf32>
    %17 = vector.broadcast %16 : vector<8x1xf32> to vector<8x16xf32>
    %18 = arith.subf %12, %17 : vector<8x16xf32>
    %19 = math.exp %18 : vector<8x16xf32>
    %20 = arith.subf %13, %16 : vector<8x1xf32>
    %21 = math.exp %20 : vector<8x1xf32>
    %c0_8 = arith.constant 0 : index
    %c0_9 = arith.constant 0 : index
    %22 = vector.load %arg5[%c0_8, %c0_9] : memref<8x1xf32, #tpu.memory_space<vmem>>, vector<8x1xf32>
    %23 = arith.mulf %21, %22 : vector<8x1xf32>
    %cst_10 = arith.constant dense<0.000000e+00> : vector<8xf32>
    %24 = vector.multi_reduction <add>, %19, %cst_10 [1] : vector<8x16xf32> to vector<8xf32>
    %25 = vector.shape_cast %24 : vector<8xf32> to vector<8x1xf32>
    %26 = arith.addf %23, %25 : vector<8x1xf32>
    %c0_11 = arith.constant 0 : index
    %c0_12 = arith.constant 0 : index
    %27 = vector.load %arg5[%c0_11, %c0_12] : memref<8x1xf32, #tpu.memory_space<vmem>>, vector<8x1xf32>
    tpu.vector_store %arg5[%c0_11, %c0_12], %26 {strides = array<i32>} : memref<8x1xf32, #tpu.memory_space<vmem>>, vector<8x1xf32>,
    %c0_13 = arith.constant 0 : index
    %c0_14 = arith.constant 0 : index
    %28 = vector.load %arg4[%c0_13, %c0_14] : memref<8x1xf32, #tpu.memory_space<vmem>>, vector<8x1xf32>
    tpu.vector_store %arg4[%c0_13, %c0_14], %16 {strides = array<i32>} : memref<8x1xf32, #tpu.memory_space<vmem>>, vector<8x1xf32>,
    %c2_i32 = arith.constant 2 : i32
    %29 = arith.cmpi eq, %arg0, %c2_i32 : i32
    %30 = arith.extui %29 : i1 to i32
    %c0_i32_15 = arith.constant 0 : i32
    %31 = arith.cmpi ne, %30, %c0_i32_15 : i32
    scf.if %31 {
      %c0_16 = arith.constant 0 : index
      %c0_17 = arith.constant 0 : index
      %32 = vector.load %arg4[%c0_16, %c0_17] : memref<8x1xf32, #tpu.memory_space<vmem>>, vector<8x1xf32>
      %c0_18 = arith.constant 0 : index
      %c0_19 = arith.constant 0 : index
      %33 = vector.load %arg5[%c0_18, %c0_19] : memref<8x1xf32, #tpu.memory_space<vmem>>, vector<8x1xf32>
      %34 = math.log %33 : vector<8x1xf32>
      %35 = arith.addf %32, %34 : vector<8x1xf32>
      %c0_20 = arith.constant 0 : index
      %c0_21 = arith.constant 0 : index
      %36 = vector.load %arg3[%c0_20, %c0_21] : memref<8x1xf32, #tpu.memory_space<vmem>>, vector<8x1xf32>
      tpu.vector_store %arg3[%c0_20, %c0_21], %35 {strides = array<i32>} : memref<8x1xf32, #tpu.memory_space<vmem>>, vector<8x1xf32>,
    } else {
    }
    return
  }
  func.func @transform_0(%arg0: i32) -> (i32, i32) {
    %c0_i32 = arith.constant 0 : i32
    %c0_i32_0 = arith.constant 0 : i32
    %c0_i32_1 = arith.constant 0 : i32
    return %c0_i32, %c0_i32_0 : i32, i32
  }
  func.func @transform_1(%arg0: i32) -> (i32, i32) {
    %c0_i32 = arith.constant 0 : i32
    %c0_i32_0 = arith.constant 0 : i32
    return %arg0, %c0_i32 : i32, i32
  }
  func.func @transform_2(%arg0: i32) -> (i32, i32) {
    %c0_i32 = arith.constant 0 : i32
    %c0_i32_0 = arith.constant 0 : i32
    %c0_i32_1 = arith.constant 0 : i32
    return %c0_i32, %c0_i32_0 : i32, i32
  }
}

</mosaic_0001>

<bundles_post_ra>
// kernel: tpu_custom_call.1
= control target key start
LH: loop header
LB: loop body
LE: loop exit
PB: predicated region body
PF: predicated region fallthrough
CT: control target
= control target key end

     0   :  { %7 = vsyncpa [#allocation5], 0  ;;  %s667_s0 = inlined_call_operand.hbm [shape: bf16[8,128], index: 0, kind: input, shape index: {}]   ;;  %s668_s1 = inlined_call_operand.hbm [shape: bf16[40,128], index: 1, kind: input, shape index: {}]   ;;  %s669_s2 = inlined_call_operand.vmem [shape: f32[8,1], index: 2, kind: output, shape index: {}]  }
   0x1   :  { %8 = vsyncpa [#allocation7], 0 }
   0x2   :  { %10 = vsyncpa [#allocation7 + $0x1], 0  ;;  %s528_s9 = smov 0   ;;  %s530_s10 = smov 0  }
   0x3   :  { %s532_s11 = smov 0   ;;  %s534_s12 = smov 0  }
   0x4 LB: > { %s547_s13 = sadd.s32 4294967295, %s502_s12   ;;  %s550_s14 = sadd.s32 1, %s502_s12   ;;  %s502_s12 = sphi %s534_s12, %s679_s12   ;;  %s498_s11 = sphi %s532_s11, %s678_s11   ;;  %s494_s10 = sphi %s530_s10, %s677_s10   ;;  %s490_s9 = sphi %s528_s9, %s676_s9  }
   0x5   : > { %s41_s15 = ssub.s32 %s502_s12, %s550_s14  ;;  %s44_s16 = sadd.s32 1, %s498_s11 }
   0x6   : > { %p42_p0 = scmp.eq.s32.totalorder %s41_s15, 0  ;;  %p51_p1 = scmp.ne.s32.totalorder %s498_s11, %s494_s10 }
   0x7   : > { %p52_p2 = scmp.eq.s32.totalorder %s502_s12, 0  ;;  %p57_p3 = scmp.ne.s32.totalorder %s494_s10, %s490_s9 }
   0x8   : > { %s560_s17 = scalar_select %p42_p0, %s498_s11, %s44_s16  }
   0x9   : > { %p562_p4 = por %p52_p2, %p51_p1  ;;  %p58_p5 = scmp.eq.s32.totalorder %s547_s13, 0 }
   0xa   : > { %p325_p6 = scmp.ge.s32.totalorder %s502_s12, 1  ;;  %p89_p7 = scmp.lt.s32.totalorder %s502_s12, 4 }
   0xb   : > { %p571_p8 = por %p58_p5, %p57_p3  ;;  %s504_s21 = smov [#allocation4]  }
   0xc   : > { %p576_p10 = pnand %p325_p6, %p89_p7  ;;  %s102_s22 = sshll.u32 %s504_s21, 4  ;;  %s103_s22 = int_to_ptr.vmem [resolvable:$true] %s102_s22 }
   0xd   : > { %s672_s19 = scalar_select %p571_p8, 1, 0 }
   0xe   : > { %p358_p11 = pneg %p576_p10  ;;  %s423_s23 = scalar_lea.vmem %s103_s22, 64 }
   0xf   : > { %p424_p0 = scmp.ne.s32.totalorder %s103_s22, %s423_s23  ;;  %p431_p3 = scmp.lt.s32.totalorder %s103_s22, %s103_s22 }
  0x10   : > { %p359_p12 = pnand %p358_p11, %p58_p5  ;;  %p432_p8 = scmp.lt.s32.totalorder %s423_s23, %s423_s23 }
  0x12   : > { %p414_p13 = pneg %p359_p12  ;;  %p433_p9 = por %p432_p8, %p431_p3 }
  0x14   : > { %p426_p1 = pnand %p424_p0, %p414_p13 }
  0x16   : > { %p427_p2 = pneg %p426_p1 }
  0x18   : > { %p434_p6 = pnand %p433_p9, %p427_p2 }
  0x1a   : > { %437 = shalt.err (!%p434_p6)
}
  0x1b   : > { %361 = dma.hbm_to_vmem [thread:$0]  (!%p359_p12), %s667_s0, 64, %s103_s22, [#allocation5]  }
  0x1c   : > { %p327_p7 = scmp.ge.s32.totalorder %s502_s12, 3 }
  0x1e   : > { %109 = sbr.rel (%p327_p7) target bundleno = 67 (0x43), region = 20 }
  0x23   : > { %112 = sbr.rel (!%p562_p4) target bundleno = 67 (0x43), region = 24  ;;  %s113_s26 = sand.u32 (%p562_p4), 1, %s498_s11  }
  0x24   : > { %s329_s27 = sshll.u32 (%p562_p4), %s502_s12, 1  ;;  %s328_s28 = sshll.u32 (%p562_p4), %s113_s26, 3 }
  0x25   : > { %s119_s29 = ssub.s32 (%p562_p4), 5, %s329_s27  ;;  %s595_s4 = scalar_lea.sflag (%p562_p4), [#allocation7], %s113_s26 }
  0x26   : > { %p120_p11 = scmp.lt.s32.totalorder (%p562_p4), %s119_s29, 2  ;;  %s117_s5 = scalar_lea.vmem (%p562_p4), [#allocation6], %s328_s28 }
  0x28   : > { %s681_s29 = smov (!%p120_p11, %s119_s29), 2 }
  0x29   : > { %s592_s30 = sshll.u32 %s681_s29, 6 }
  0x2a   : > { %s124_s3 = ssub.s32 128, %s592_s30 }
  0x2b   : > { %125 = vsyncadd %s595_s4, %s124_s3  ;;  %p331_p4 = scmp.ne.s32.totalorder %s592_s30, 0  ;;  %s344_s6 = sshll.u32 %s502_s12, 7 }
  0x2c   : > { %s603_s9 = scalar_lea.hbm %s668_s1, %s344_s6  ;;  %s130_s15 = sshll.u32 %s117_s5, 4  ;;  %s605_s15 = int_to_ptr.vmem [resolvable:$true] %s130_s15 }
  0x2d   : > { %s438_s16 = scalar_lea.hbm %s603_s9, %s592_s30  ;;  %s442_s12 = scalar_lea.hbm %s668_s1, 320 }
  0x2e   : > { %p439_p8 = scmp.ne.s32.totalorder %s603_s9, %s438_s16  ;;  %p443_p13 = scmp.lt.s32.totalorder %s603_s9, %s668_s1 }
  0x2f   : > { %p444_p0 = scmp.lt.s32.totalorder %s442_s12, %s438_s16 }
  0x30   : > { %p440_p9 = pnand %p439_p8, %p331_p4 }
  0x31   : > { %p445_p1 = por %p444_p0, %p443_p13 }
  0x32   : > { %p441_p12 = pneg %p440_p9 }
  0x34   : > { %p446_p2 = pnand %p445_p1, %p441_p12 }
  0x36   : > { %449 = shalt.err (!%p446_p2)
}
  0x37   : > { %s450_s24 = scalar_lea.vmem %s605_s15, %s592_s30  ;;  %s505_s25 = smov [#allocation6]  }
  0x38   : > { %p451_p3 = scmp.ne.s32.totalorder %s605_s15, %s450_s24  ;;  %s454_s26 = sshll.u32 %s505_s25, 4  ;;  %s455_s26 = int_to_ptr.vmem [resolvable:$false] %s454_s26 }
  0x39   : > { %s456_s27 = scalar_lea.vmem %s455_s26, 256  ;;  %p457_p11 = scmp.lt.s32.totalorder %s605_s15, %s455_s26 }
  0x3a   : > { %p452_p6 = pnand %p451_p3, %p331_p4  ;;  %p458_p8 = scmp.lt.s32.totalorder %s456_s27, %s450_s24 }
  0x3c   : > { %p453_p7 = pneg %p452_p6  ;;  %p459_p9 = por %p458_p8, %p457_p11 }
  0x3e   : > { %p460_p13 = pnand %p459_p9, %p453_p7 }
  0x40   : > { %463 = shalt.err (!%p460_p13)
}
  0x41   : > { %s506_s28 = smov 64   ;;  %s507_s29 = smov 4  }
  0x42   : > { %136 = dma.hbm_to_vmem [thread:$0]  (%p331_p4), %s603_s9, %s592_s30, %s605_s15, %s595_s4, %s506_s28, %s506_s28, %s507_s29  }
  0x43 PF: > { %142 = sbr.rel (%p576_p10) target bundleno = 740 (0x2e4), region = 28 }
  0x48   : > { %481 = dma.done.wait (%p58_p5), [#allocation5], 64  }
  0x49   : > { %483 = vsyncadd (%p58_p5), [#allocation5], 4294967232  ;;  %s148_s3 = sand.u32 1, %s494_s10   ;;  %p674_p12 = scmp.ne.s32.totalorder %s672_s19, 0 }
  0x4a   : > { %s337_s5 = sshll.u32 %s148_s3, 3  ;;  %s149_s6 = scalar_lea.sflag [#allocation7], %s148_s3 }
  0x4b   : > { %s152_s7 = scalar_lea.vmem [#allocation6], %s337_s5 }
  0x4c   : > { %485 = dma.done.wait (%p674_p12), %s149_s6, 128  }
  0x4d   : > { %487 = vsyncadd (%p674_p12), %s149_s6, 4294967168  ;;  %p675_p4 = scmp.ne.s32.totalorder %s547_s13, 0 }
  0x4f   : > { %177 = sbr.rel (%p675_p4) target bundleno = 86 (0x56), region = 40 }
  0x54   : > { %vm178_vm0 = vcmask 7168   ;;  %v508_v0 = vmov -inf   ;;  %v509_v1 = vmov 0.0  }
  0x55   : > { %179 = vst.msk [vmem:[#allocation2] sm:$0xff] %vm178_vm0, %v508_v0  ;;  %180 = vst.msk [vmem:[#allocation3] sm:$0xff] %vm178_vm0, %v509_v1 }
  0x56 PF: > { %v405_v2 = vld [vmem:[%s152_s7] sm:$0xff]   ;;  %v510_v3 = vmov 0.0   ;;  %vm511_vm1 = vmmov 0   ;;  %v181_v4 = vld [vmem:[#allocation4] sm:$0xf]  ;;  %s340_s19 = sshll.u32 %s547_s13, 4  ;;  %v232_v5 = vlaneseq }
  0x57   : > { %347 = vmatprep.subr.bf16.mxu0 %v510_v3  ;;  %349 = vmatprep.mubr.msk.bf16.mxu0 %vm511_vm1, %v510_v3  ;;  %s231_s20 = ssub.s32 40, %s340_s19  ;;  %vm238_vm3 = vcmask 130048   ;;  %v512_v14 = vmov 0   ;;  %vm260_vm4 = vcmask 7168   ;;  %p341_p5 = scmp.ne.s32.totalorder %s547_s13, 2 }
  0x58   : > { %348 = vmatpush3.bf16.xpose.msra.mxu0 %v405_v2  ;;  %v233_v6 = vand.u32 127, %v232_v5  ;;  %v234_v7 = vstv %s231_s20  ;;  %404 = vset.pattern.permute.xlu0 %v512_v14 }
  0x5a   : > { %vm235_vm2 = vcmp.lt.s32.totalorder %v233_v6, %v234_v7 }
  0x5c   : > { %v237_v15 = vld [vmem:[#allocation2] sm:$0xff]  ;;  %v254_v26 = vld [vmem:[#allocation3] sm:$0xff] }
  0x5f   : > { %350 = vmatmul.mubr.bf16.vlgmr.msra.gmra.mxu0 %v181_v4 }
 0x11f   : > { %v224_v8 = vpop.f32.mrf.mxu0 }
 0x120   : > { %v236_v9 = vsel %vm235_vm2, %v224_v8, -inf }
 0x121   : > { %v351_v10 = vpop.f32.mrf.mxu0  ;;  %v239_v11 = vsel %vm238_vm3, %v236_v9, -inf }
 0x122   : > { %240 = vmax.xlane.f32.xlu0 %v239_v11 }
 0x123   : > { %v227_v12 = vpop.f32.mrf.mxu0 }
 0x125   : > { %v352_v13 = vpop.f32.mrf.mxu0 }
 0x1ab   : > { %v241_v16 = vpop.xlane.xlu0 %240 }
 0x1ac   : > { %v242_v17 = vmax.f32 %v237_v15, %v241_v16 }
 0x1ae   : > { %v251_v18 = vsub.f32 %v237_v15, %v242_v17  ;;  %262 = vst.msk [vmem:[#allocation2] sm:$0xff] %vm260_vm4, %v242_v17  ;;  %245 = vperm.xlu0 %404, %v242_v17  }
 0x1b0   : > { %v252_v24 = vmul.f32 1.442695, %v251_v18 }
 0x229   : > { %v246_v19 = vpop.permute.xlu0 %245 }
 0x22a   : > { %v248_v20 = vsub.f32 %v236_v9, %v246_v19 }
 0x22c   : > { %v249_v21 = vmul.f32 1.442695, %v248_v20 }
 0x22e   : > { %406 = vpow2.f32 %v249_v21 }
 0x22f   : > { %408 = vpow2.f32 %v252_v24 }
 0x23b   : > { %v407_v22 = vpop.eup %406 }
 0x23c   : > { %v256_v23 = vsel %vm238_vm3, %v407_v22, 0.0  ;;  %v409_v25 = vpop.eup %408 }
 0x23d   : > { %257 = vadd.xlane.f32.xlu1 %v256_v23  ;;  %v255_v27 = vmul.f32 %v409_v25, %v254_v26 }
 0x2c5   : > { %266 = sbr.rel (%p341_p5) target bundleno = 740 (0x2e4), region = 44 }
 0x2c6   : > { %v258_v28 = vpop.xlane.xlu1 %257 }
 0x2c7   : > { %v259_v29 = vadd.f32 %v258_v28, %v255_v27 }
 0x2c9   : > { %261 = vst.msk [vmem:[#allocation3] sm:$0xff] %vm260_vm4, %v259_v29 }
 0x2ca   : > { %v267_v32 = vld [vmem:[#allocation2] sm:$0xff] }
 0x2d0   : > { %v268_v30 = vld [vmem:[#allocation3] sm:$0xff] }
 0x2d1   : > { %410 = vlog2.f32 %v268_v30 }
 0x2de   : > { %v411_v31 = vpop.eup %410 }
 0x2df   : > { %v270_v33 = vmul.f32 0.6931472, %v411_v31 }
 0x2e1   : > { %v271_v34 = vadd.f32 %v270_v33, %v267_v32 }
 0x2e3   : > { %272 = vst.msk [vmem:[%s669_s2] sm:$0xff] %vm260_vm4, %v271_v34 }
 0x2e4 PF: > { %p13_p10 = scmp.ge.s32.totalorder %s550_s14, 5   ;;  %s676_s9 = smov %s494_s10 }
 0x2e5   : > { %s677_s10 = smov %s498_s11  ;;  %s678_s11 = smov %s560_s17 }
 0x2e6   : > { %s679_s12 = smov %s550_s14  ;;  %15 = sbr.rel (!%p13_p10) target bundleno = 4 (0x4), region = 77 }
 0x2eb   :  { %284 = vsyncpa [#allocation5], 1 }
 0x2ec   :  { %286 = vsyncpa [#allocation5 + $0x1], 1 }
 0x2ed   :  { %287 = vsyncpa [#allocation7], 1 }
 0x2ee   :  { %289 = vsyncpa [#allocation7 + $0x1], 1 }

</bundles_post_ra>
